<compile_context>
chip_gen: v7x
topology: tpu7x:2x2x1
jax: 0.10.0
libtpu: 0.0.40
codegen_flags: <defaults>
</compile_context>

<pallas_src>
import functools
import math

import numpy as np
import jax
import jax.numpy as jnp
from jax.experimental import pallas as pl
from jax.experimental.pallas import tpu as pltpu


LANE = 128


def _round_up(v, m):
    return ((v + m - 1) // m) * m


# --------------------------------------------------------------------------- #
# Fused kernel body: h -> (bf16 @ M_l, f32 acc) -> +bias -> ReLU/Tanh -> ... -> out
# --------------------------------------------------------------------------- #
def _decoder_kernel(*refs, num_layers):
    x_ref = refs[0]
    o_ref = refs[-1]
    h = x_ref[...]                                          # (TB, K0p) float32
    for l in range(num_layers):
        m_ref = refs[1 + 2 * l]                             # (Kp, Np) bfloat16
        b_ref = refs[2 + 2 * l]                             # (1, Np)  float32
        acc = jnp.dot(h.astype(jnp.bfloat16), m_ref[...],
                      preferred_element_type=jnp.float32)   # MXU, f32 accumulate
        h = acc + b_ref[...]
        if l == num_layers - 1:
            h = jnp.tanh(h)                                 # EUP, f32
        else:
            h = jnp.maximum(h, 0.0)                         # VPU, f32
    o_ref[...] = h.astype(o_ref.dtype)


# --------------------------------------------------------------------------- #
# One-time weight preprocessing: fold each ConvTranspose2d into a dense GEMM,
# then zero-pad to lane-dense shapes and cast weights to bf16.
# --------------------------------------------------------------------------- #
def _scatter_matrix(n_out, n_in):
    """S[o, i, k] = 1 iff o == 2*i + k - 1   (stride=2, padding=1, K=4)."""
    s = np.zeros((n_out, n_in, 4), np.float32)
    for o in range(n_out):
        for k in range(4):
            num = o + 1 - k
            if num % 2 == 0 and 0 <= num // 2 < n_in:
                s[o, num // 2, k] = 1.0
    return s


def build_fused_decoder(params, h0, w0, *, weight_dtype=jnp.bfloat16):
    """Exact rewrite of each ConvTranspose2d(k=4,s=2,p=1) as y_flat = x_flat @ M + b_row,
       with K/N zero-padded to multiples of 128 (lane-dense chained GEMMs)."""
    raw = []
    hin, win = h0, w0
    for (W, b) in params:                                    # W: (Cin, Cout, 4, 4)
        cin, cout = W.shape[0], W.shape[1]
        hout, wout = 2 * hin, 2 * win
        sh = jnp.asarray(_scatter_matrix(hout, hin))         # (Hout, Hin, 4)
        sw = jnp.asarray(_scatter_matrix(wout, win))         # (Wout, Win, 4)
        m6 = jnp.einsum('pik,qjl,cdkl->ijcpqd', sh, sw, W)   # (Hin,Win,Cin,Hout,Wout,Cout)
        K, N = hin * win * cin, hout * wout * cout
        M = m6.reshape(K, N)
        brow = jnp.tile(b, hout * wout).reshape(1, N)        # (pix*Cout + co) order
        raw.append((M, brow, K, N))
        hin, win = hout, wout

    mats, biases = [], []
    k_pad = _round_up(raw[0][2], LANE)                       # padded input width
    for (M, brow, K, N) in raw:
        n_pad = _round_up(N, LANE)
        Mp = jnp.zeros((k_pad, n_pad), jnp.float32).at[:K, :N].set(M)
        bp = jnp.zeros((1, n_pad), jnp.float32).at[:, :N].set(brow)
        mats.append(Mp.astype(weight_dtype))                 # bf16 MXU operand
        biases.append(bp)                                    # f32 bias row
        k_pad = n_pad                                        # chain: next K = padded N
    return mats, biases


# --------------------------------------------------------------------------- #
# Forward pass: one fused pallas_call for the whole decoder.
# --------------------------------------------------------------------------- #
def decoder_forward(x_nchw, mats, biases, *, single_buffer_weights=True):
    B, C0, H0, W0 = x_nchw.shape
    L = len(mats)
    Hf, Wf, Cf = H0 * 2 ** L, W0 * 2 ** L, 1
    Nf = Hf * Wf * Cf                      # true final width (pre-padding)
    K0 = C0 * H0 * W0
    K0p = mats[0].shape[0]
    Nfp = mats[-1].shape[1]
    max_np = max(m.shape[1] for m in mats)

    # ---- VMEM budget / limit (v7x: 64 MiB physical vs 128 MiB on v5e/v6e) ------
    try:
        vmem_cap = int(pltpu.get_tpu_info().vmem_capacity_bytes)
    except Exception:
        vmem_cap = 64 * 1024 * 1024        # conservative (v7x-sized) fallback
    vmem_budget = int(0.75 * vmem_cap)
    vmem_limit = int(min(0.85 * vmem_cap, 100 * 1024 * 1024))

    weight_bytes = sum(int(np.prod(m.shape)) * m.dtype.itemsize for m in mats)
    bias_bytes = sum(int(np.prod(b.shape)) * 4 for b in biases)

    def fits(tb):
        inbuf = 2 * tb * K0p * 4                       # double-buffered input block
        outbuf = 2 * tb * Nfp * 4                      # double-buffered output block
        live = 3 * tb * max_np * 4                     # in-flight activations (generous)
        wbuf = 2 * (weight_bytes + bias_bytes)         # conservative (double-buffered)
        return inbuf + outbuf + live + wbuf <= vmem_budget

    # ---- batch tile: large sublane-dense tiles, >=2 grid steps when possible ----
    TARGET_TB = 256
    if B >= 2 * TARGET_TB:
        TB = TARGET_TB
    elif B >= 16:
        TB = _round_up(pl.cdiv(B, 2), 8)   # >=2 steps: both v7x TensorCores active
    else:
        TB = _round_up(max(B, 1), 8)
    while TB > 8 and not fits(TB):
        TB = _round_up(TB // 2, 8)
    B_pad = _round_up(B, TB)
    grid = (B_pad // TB,)

    # ---- NCHW -> NHWC flat; zero-pad batch rows and feature columns -------------
    x2 = jnp.transpose(x_nchw, (0, 2, 3, 1)).reshape(B, K0)
    x2 = jnp.pad(x2, ((0, B_pad - B), (0, K0p - K0)))

    # ---- BlockSpecs --------------------------------------------------------------
    def const_spec(shape):
        idx = lambda i: (0,) * len(shape)
        if single_buffer_weights:
            try:   # grid-invariant block: single buffer is enough
                return pl.BlockSpec(shape, idx, pipeline_mode=pl.Buffered(1))
            except Exception:
                pass
        return pl.BlockSpec(shape, idx)

    in_specs = [pl.BlockSpec((TB, K0p), lambda i: (i, 0))]
    flat_params = []
    for M, bb in zip(mats, biases):
        flat_params += [M, bb]
        in_specs.append(const_spec(M.shape))
        in_specs.append(const_spec(bb.shape))

    flops = 2 * B_pad * sum(m.shape[0] * m.shape[1] for m in mats)
    bytes_accessed = B_pad * K0p * 4 + B_pad * Nfp * 4 + weight_bytes + bias_bytes
    cost = pl.CostEstimate(flops=int(flops),
                           transcendentals=int(B_pad * Nfp),
                           bytes_accessed=int(bytes_accessed))

    out = pl.pallas_call(
        functools.partial(_decoder_kernel, num_layers=L),
        grid=grid,
        in_specs=in_specs,
        out_specs=pl.BlockSpec((TB, Nfp), lambda i: (i, 0)),
        out_shape=jax.ShapeDtypeStruct((B_pad, Nfp), jnp.float32),
        compiler_params=pltpu.CompilerParams(
            dimension_semantics=("parallel",),
            vmem_limit_bytes=vmem_limit),
        cost_estimate=cost,
    )(x2, *flat_params)

    # un-pad, flat -> NHWC -> NCHW (Cf == 1 so layout-trivial)
    y = out[:B, :Nf].reshape(B, Hf, Wf, Cf).transpose(0, 3, 1, 2)
    return y


# --------------------------------------------------------------------------- #
# Parameter init (mirrors the PyTorch module) and pure-JAX f32 reference.
# --------------------------------------------------------------------------- #
def init_decoder_params(output_size, key):
    num_conv = int(math.log2(output_size))
    params = []
    for i in range(num_conv, 0, -1):
        cin = 2 ** i
        cout = 1 if i == 1 else 2 ** (i - 1)
        key, k1, k2 = jax.random.split(key, 3)
        bound = 1.0 / math.sqrt(cin * 4 * 4)
        W = jax.random.uniform(k1, (cin, cout, 4, 4), jnp.float32, -bound, bound)
        b = jax.random.uniform(k2, (cout,), jnp.float32, -bound, bound)
        params.append((W, b))
    return params


def ref_decoder(x_nchw, params):
    """Pure-JAX reference: ConvTranspose2d == dilated conv with flipped kernel."""
    x = x_nchw
    n = len(params)
    for idx, (W, b) in enumerate(params):
        rhs = jnp.transpose(jnp.flip(W, (2, 3)), (1, 0, 2, 3))  # OIHW
        x = jax.lax.conv_general_dilated(
            x, rhs, window_strides=(1, 1), padding=[(2, 2), (2, 2)],
            lhs_dilation=(2, 2),
            dimension_numbers=('NCHW', 'OIHW', 'NCHW'))
        x = x + b.reshape(1, -1, 1, 1)
        x = jnp.tanh(x) if idx == n - 1 else jnp.maximum(x, 0.0)
    return x


if __name__ == "__main__":
    OUTPUT_SIZE = 16                      # 4 ConvTranspose2d layers: 16->8->4->2->1 channels
    B = 2
    num_conv = int(math.log2(OUTPUT_SIZE))
    cin0 = 2 ** num_conv                  # 16 input channels
    h0 = OUTPUT_SIZE // (2 ** num_conv)   # 1x1 spatial latent -> 16x16 output

    key = jax.random.PRNGKey(0)
    kp, kx = jax.random.split(key)
    params = init_decoder_params(OUTPUT_SIZE, kp)
    x = jax.random.normal(kx, (B, cin0, h0, h0), jnp.float32)

    # One-time weight preprocessing (outside the hot path).
    mats, biases = build_fused_decoder(params, h0, h0)

    fwd = jax.jit(decoder_forward)
    try:
        y = jax.block_until_ready(fwd(x, mats, biases))
    except Exception:
        # Robustness: if this JAX build rejects single-buffered constant blocks
        # (pl.Buffered(1)), retry with default double-buffered weight blocks.
        fwd = jax.jit(functools.partial(decoder_forward, single_buffer_weights=False))
        y = jax.block_until_ready(fwd(x, mats, biases))
    assert y.shape == (B, 1, OUTPUT_SIZE, OUTPUT_SIZE), y.shape

    y_ref = jax.block_until_ready(ref_decoder(x, params))
    max_err = float(jnp.max(jnp.abs(y - y_ref)))
    # bf16 MXU operands with f32 accumulation: tolerance matches bf16-conv numerics.
    assert max_err < 2e-2, max_err

    print("KERNEL_OK")
</pallas_src>

<mosaic_0001>
module attributes {stable_mosaic.version = 11 : i64} {
  func.func @_decoder_kernel(%arg0: i32, %arg1: memref<8x128xf32, #tpu.memory_space<vmem>>, %arg2: memref<128x128xbf16, #tpu.memory_space<vmem>>, %arg3: memref<1x128xf32, #tpu.memory_space<vmem>>, %arg4: memref<128x128xbf16, #tpu.memory_space<vmem>>, %arg5: memref<1x128xf32, #tpu.memory_space<vmem>>, %arg6: memref<128x128xbf16, #tpu.memory_space<vmem>>, %arg7: memref<1x128xf32, #tpu.memory_space<vmem>>, %arg8: memref<128x256xbf16, #tpu.memory_space<vmem>>, %arg9: memref<1x256xf32, #tpu.memory_space<vmem>>, %arg10: memref<8x256xf32, #tpu.memory_space<vmem>>) attributes {dimension_semantics = [#tpu.dimension_semantics<parallel>], iteration_bounds = array<i64: 1>, scalar_prefetch = 0 : i64, scratch_operands = 0 : i64, tpu.core_type = #tpu.core_type<tc>, window_params = [{transform_indices = @transform_0, window_bounds = array<i64: 8, 128>}, {pipeline_mode = #tpu.pipeline_mode<synchronous>, transform_indices = @transform_1, window_bounds = array<i64: 128, 128>}, {pipeline_mode = #tpu.pipeline_mode<synchronous>, transform_indices = @transform_2, window_bounds = array<i64: 1, 128>}, {pipeline_mode = #tpu.pipeline_mode<synchronous>, transform_indices = @transform_3, window_bounds = array<i64: 128, 128>}, {pipeline_mode = #tpu.pipeline_mode<synchronous>, transform_indices = @transform_4, window_bounds = array<i64: 1, 128>}, {pipeline_mode = #tpu.pipeline_mode<synchronous>, transform_indices = @transform_5, window_bounds = array<i64: 128, 128>}, {pipeline_mode = #tpu.pipeline_mode<synchronous>, transform_indices = @transform_6, window_bounds = array<i64: 1, 128>}, {pipeline_mode = #tpu.pipeline_mode<synchronous>, transform_indices = @transform_7, window_bounds = array<i64: 128, 256>}, {pipeline_mode = #tpu.pipeline_mode<synchronous>, transform_indices = @transform_8, window_bounds = array<i64: 1, 256>}, {transform_indices = @transform_9, window_bounds = array<i64: 8, 256>}]} {
    %c0 = arith.constant 0 : index
    %c0_0 = arith.constant 0 : index
    %0 = vector.load %arg1[%c0, %c0_0] : memref<8x128xf32, #tpu.memory_space<vmem>>, vector<8x128xf32>
    %1 = arith.truncf %0 : vector<8x128xf32> to vector<8x128xbf16>
    %c0_1 = arith.constant 0 : index
    %c0_2 = arith.constant 0 : index
    %2 = vector.load %arg2[%c0_1, %c0_2] : memref<128x128xbf16, #tpu.memory_space<vmem>>, vector<128x128xbf16>
    %cst = arith.constant dense<0.000000e+00> : vector<8x128xf32>
    %3 = tpu.matmul %1, %2, %cst {dimension_numbers = #tpu.dot_dimension_numbers<[1], [0], [0], [1], [0, 0, 1, 1], [], []>} : vector<8x128xbf16>, vector<128x128xbf16>, vector<8x128xf32> -> vector<8x128xf32>
    %c0_3 = arith.constant 0 : index
    %c0_4 = arith.constant 0 : index
    %4 = vector.load %arg3[%c0_3, %c0_4] : memref<1x128xf32, #tpu.memory_space<vmem>>, vector<1x128xf32>
    %5 = vector.broadcast %4 : vector<1x128xf32> to vector<8x128xf32>
    %6 = arith.addf %3, %5 : vector<8x128xf32>
    %cst_5 = arith.constant 0.000000e+00 : f32
    %7 = vector.broadcast %cst_5 : f32 to vector<8x128xf32>
    %8 = arith.maximumf %6, %7 : vector<8x128xf32>
    %9 = arith.truncf %8 : vector<8x128xf32> to vector<8x128xbf16>
    %c0_6 = arith.constant 0 : index
    %c0_7 = arith.constant 0 : index
    %10 = vector.load %arg4[%c0_6, %c0_7] : memref<128x128xbf16, #tpu.memory_space<vmem>>, vector<128x128xbf16>
    %cst_8 = arith.constant dense<0.000000e+00> : vector<8x128xf32>
    %11 = tpu.matmul %9, %10, %cst_8 {dimension_numbers = #tpu.dot_dimension_numbers<[1], [0], [0], [1], [0, 0, 1, 1], [], []>} : vector<8x128xbf16>, vector<128x128xbf16>, vector<8x128xf32> -> vector<8x128xf32>
    %c0_9 = arith.constant 0 : index
    %c0_10 = arith.constant 0 : index
    %12 = vector.load %arg5[%c0_9, %c0_10] : memref<1x128xf32, #tpu.memory_space<vmem>>, vector<1x128xf32>
    %13 = vector.broadcast %12 : vector<1x128xf32> to vector<8x128xf32>
    %14 = arith.addf %11, %13 : vector<8x128xf32>
    %cst_11 = arith.constant 0.000000e+00 : f32
    %15 = vector.broadcast %cst_11 : f32 to vector<8x128xf32>
    %16 = arith.maximumf %14, %15 : vector<8x128xf32>
    %17 = arith.truncf %16 : vector<8x128xf32> to vector<8x128xbf16>
    %c0_12 = arith.constant 0 : index
    %c0_13 = arith.constant 0 : index
    %18 = vector.load %arg6[%c0_12, %c0_13] : memref<128x128xbf16, #tpu.memory_space<vmem>>, vector<128x128xbf16>
    %cst_14 = arith.constant dense<0.000000e+00> : vector<8x128xf32>
    %19 = tpu.matmul %17, %18, %cst_14 {dimension_numbers = #tpu.dot_dimension_numbers<[1], [0], [0], [1], [0, 0, 1, 1], [], []>} : vector<8x128xbf16>, vector<128x128xbf16>, vector<8x128xf32> -> vector<8x128xf32>
    %c0_15 = arith.constant 0 : index
    %c0_16 = arith.constant 0 : index
    %20 = vector.load %arg7[%c0_15, %c0_16] : memref<1x128xf32, #tpu.memory_space<vmem>>, vector<1x128xf32>
    %21 = vector.broadcast %20 : vector<1x128xf32> to vector<8x128xf32>
    %22 = arith.addf %19, %21 : vector<8x128xf32>
    %cst_17 = arith.constant 0.000000e+00 : f32
    %23 = vector.broadcast %cst_17 : f32 to vector<8x128xf32>
    %24 = arith.maximumf %22, %23 : vector<8x128xf32>
    %25 = arith.truncf %24 : vector<8x128xf32> to vector<8x128xbf16>
    %c0_18 = arith.constant 0 : index
    %c0_19 = arith.constant 0 : index
    %26 = vector.load %arg8[%c0_18, %c0_19] : memref<128x256xbf16, #tpu.memory_space<vmem>>, vector<128x256xbf16>
    %cst_20 = arith.constant dense<0.000000e+00> : vector<8x256xf32>
    %27 = tpu.matmul %25, %26, %cst_20 {dimension_numbers = #tpu.dot_dimension_numbers<[1], [0], [0], [1], [0, 0, 1, 1], [], []>} : vector<8x128xbf16>, vector<128x256xbf16>, vector<8x256xf32> -> vector<8x256xf32>
    %c0_21 = arith.constant 0 : index
    %c0_22 = arith.constant 0 : index
    %28 = vector.load %arg9[%c0_21, %c0_22] : memref<1x256xf32, #tpu.memory_space<vmem>>, vector<1x256xf32>
    %29 = vector.broadcast %28 : vector<1x256xf32> to vector<8x256xf32>
    %30 = arith.addf %27, %29 : vector<8x256xf32>
    %31 = math.tanh %30 : vector<8x256xf32>
    %c0_23 = arith.constant 0 : index
    %c0_24 = arith.constant 0 : index
    %32 = vector.load %arg10[%c0_23, %c0_24] : memref<8x256xf32, #tpu.memory_space<vmem>>, vector<8x256xf32>
    tpu.vector_store %arg10[%c0_23, %c0_24], %31 {strides = array<i32>} : memref<8x256xf32, #tpu.memory_space<vmem>>, vector<8x256xf32>,
    return
  }
  func.func @transform_0(%arg0: i32) -> (i32, i32) {
    %c0_i32 = arith.constant 0 : i32
    %c0_i32_0 = arith.constant 0 : i32
    return %arg0, %c0_i32 : i32, i32
  }
  func.func @transform_1(%arg0: i32) -> (i32, i32) {
    %c0_i32 = arith.constant 0 : i32
    %c0_i32_0 = arith.constant 0 : i32
    %c0_i32_1 = arith.constant 0 : i32
    return %c0_i32, %c0_i32_0 : i32, i32
  }
  func.func @transform_2(%arg0: i32) -> (i32, i32) {
    %c0_i32 = arith.constant 0 : i32
    %c0_i32_0 = arith.constant 0 : i32
    %c0_i32_1 = arith.constant 0 : i32
    return %c0_i32, %c0_i32_0 : i32, i32
  }
  func.func @transform_3(%arg0: i32) -> (i32, i32) {
    %c0_i32 = arith.constant 0 : i32
    %c0_i32_0 = arith.constant 0 : i32
    %c0_i32_1 = arith.constant 0 : i32
    return %c0_i32, %c0_i32_0 : i32, i32
  }
  func.func @transform_4(%arg0: i32) -> (i32, i32) {
    %c0_i32 = arith.constant 0 : i32
    %c0_i32_0 = arith.constant 0 : i32
    %c0_i32_1 = arith.constant 0 : i32
    return %c0_i32, %c0_i32_0 : i32, i32
  }
  func.func @transform_5(%arg0: i32) -> (i32, i32) {
    %c0_i32 = arith.constant 0 : i32
    %c0_i32_0 = arith.constant 0 : i32
    %c0_i32_1 = arith.constant 0 : i32
    return %c0_i32, %c0_i32_0 : i32, i32
  }
  func.func @transform_6(%arg0: i32) -> (i32, i32) {
    %c0_i32 = arith.constant 0 : i32
    %c0_i32_0 = arith.constant 0 : i32
    %c0_i32_1 = arith.constant 0 : i32
    return %c0_i32, %c0_i32_0 : i32, i32
  }
  func.func @transform_7(%arg0: i32) -> (i32, i32) {
    %c0_i32 = arith.constant 0 : i32
    %c0_i32_0 = arith.constant 0 : i32
    %c0_i32_1 = arith.constant 0 : i32
    return %c0_i32, %c0_i32_0 : i32, i32
  }
  func.func @transform_8(%arg0: i32) -> (i32, i32) {
    %c0_i32 = arith.constant 0 : i32
    %c0_i32_0 = arith.constant 0 : i32
    %c0_i32_1 = arith.constant 0 : i32
    return %c0_i32, %c0_i32_0 : i32, i32
  }
  func.func @transform_9(%arg0: i32) -> (i32, i32) {
    %c0_i32 = arith.constant 0 : i32
    %c0_i32_0 = arith.constant 0 : i32
    return %arg0, %c0_i32 : i32, i32
  }
}

module attributes {stable_mosaic.version = 11 : i64} {
  func.func @_decoder_kernel(%arg0: i32, %arg1: memref<8x128xf32, #tpu.memory_space<vmem>>, %arg2: memref<128x128xbf16, #tpu.memory_space<vmem>>, %arg3: memref<1x128xf32, #tpu.memory_space<vmem>>, %arg4: memref<128x128xbf16, #tpu.memory_space<vmem>>, %arg5: memref<1x128xf32, #tpu.memory_space<vmem>>, %arg6: memref<128x128xbf16, #tpu.memory_space<vmem>>, %arg7: memref<1x128xf32, #tpu.memory_space<vmem>>, %arg8: memref<128x256xbf16, #tpu.memory_space<vmem>>, %arg9: memref<1x256xf32, #tpu.memory_space<vmem>>, %arg10: memref<8x256xf32, #tpu.memory_space<vmem>>) attributes {dimension_semantics = [#tpu.dimension_semantics<parallel>], iteration_bounds = array<i64: 1>, scalar_prefetch = 0 : i64, scratch_operands = 0 : i64, tpu.core_type = #tpu.core_type<tc>, window_params = [{transform_indices = @transform_0, window_bounds = array<i64: 8, 128>}, {pipeline_mode = #tpu.pipeline_mode<synchronous>, transform_indices = @transform_1, window_bounds = array<i64: 128, 128>}, {pipeline_mode = #tpu.pipeline_mode<synchronous>, transform_indices = @transform_2, window_bounds = array<i64: 1, 128>}, {pipeline_mode = #tpu.pipeline_mode<synchronous>, transform_indices = @transform_3, window_bounds = array<i64: 128, 128>}, {pipeline_mode = #tpu.pipeline_mode<synchronous>, transform_indices = @transform_4, window_bounds = array<i64: 1, 128>}, {pipeline_mode = #tpu.pipeline_mode<synchronous>, transform_indices = @transform_5, window_bounds = array<i64: 128, 128>}, {pipeline_mode = #tpu.pipeline_mode<synchronous>, transform_indices = @transform_6, window_bounds = array<i64: 1, 128>}, {pipeline_mode = #tpu.pipeline_mode<synchronous>, transform_indices = @transform_7, window_bounds = array<i64: 128, 256>}, {pipeline_mode = #tpu.pipeline_mode<synchronous>, transform_indices = @transform_8, window_bounds = array<i64: 1, 256>}, {transform_indices = @transform_9, window_bounds = array<i64: 8, 256>}]} {
    %c0 = arith.constant 0 : index
    %c0_0 = arith.constant 0 : index
    %0 = vector.load %arg1[%c0, %c0_0] : memref<8x128xf32, #tpu.memory_space<vmem>>, vector<8x128xf32>
    %1 = arith.truncf %0 : vector<8x128xf32> to vector<8x128xbf16>
    %c0_1 = arith.constant 0 : index
    %c0_2 = arith.constant 0 : index
    %2 = vector.load %arg2[%c0_1, %c0_2] : memref<128x128xbf16, #tpu.memory_space<vmem>>, vector<128x128xbf16>
    %cst = arith.constant dense<0.000000e+00> : vector<8x128xf32>
    %3 = tpu.matmul %1, %2, %cst {dimension_numbers = #tpu.dot_dimension_numbers<[1], [0], [0], [1], [0, 0, 1, 1], [], []>} : vector<8x128xbf16>, vector<128x128xbf16>, vector<8x128xf32> -> vector<8x128xf32>
    %c0_3 = arith.constant 0 : index
    %c0_4 = arith.constant 0 : index
    %4 = vector.load %arg3[%c0_3, %c0_4] : memref<1x128xf32, #tpu.memory_space<vmem>>, vector<1x128xf32>
    %5 = vector.broadcast %4 : vector<1x128xf32> to vector<8x128xf32>
    %6 = arith.addf %3, %5 : vector<8x128xf32>
    %cst_5 = arith.constant 0.000000e+00 : f32
    %7 = vector.broadcast %cst_5 : f32 to vector<8x128xf32>
    %8 = arith.maximumf %6, %7 : vector<8x128xf32>
    %9 = arith.truncf %8 : vector<8x128xf32> to vector<8x128xbf16>
    %c0_6 = arith.constant 0 : index
    %c0_7 = arith.constant 0 : index
    %10 = vector.load %arg4[%c0_6, %c0_7] : memref<128x128xbf16, #tpu.memory_space<vmem>>, vector<128x128xbf16>
    %cst_8 = arith.constant dense<0.000000e+00> : vector<8x128xf32>
    %11 = tpu.matmul %9, %10, %cst_8 {dimension_numbers = #tpu.dot_dimension_numbers<[1], [0], [0], [1], [0, 0, 1, 1], [], []>} : vector<8x128xbf16>, vector<128x128xbf16>, vector<8x128xf32> -> vector<8x128xf32>
    %c0_9 = arith.constant 0 : index
    %c0_10 = arith.constant 0 : index
    %12 = vector.load %arg5[%c0_9, %c0_10] : memref<1x128xf32, #tpu.memory_space<vmem>>, vector<1x128xf32>
    %13 = vector.broadcast %12 : vector<1x128xf32> to vector<8x128xf32>
    %14 = arith.addf %11, %13 : vector<8x128xf32>
    %cst_11 = arith.constant 0.000000e+00 : f32
    %15 = vector.broadcast %cst_11 : f32 to vector<8x128xf32>
    %16 = arith.maximumf %14, %15 : vector<8x128xf32>
    %17 = arith.truncf %16 : vector<8x128xf32> to vector<8x128xbf16>
    %c0_12 = arith.constant 0 : index
    %c0_13 = arith.constant 0 : index
    %18 = vector.load %arg6[%c0_12, %c0_13] : memref<128x128xbf16, #tpu.memory_space<vmem>>, vector<128x128xbf16>
    %cst_14 = arith.constant dense<0.000000e+00> : vector<8x128xf32>
    %19 = tpu.matmul %17, %18, %cst_14 {dimension_numbers = #tpu.dot_dimension_numbers<[1], [0], [0], [1], [0, 0, 1, 1], [], []>} : vector<8x128xbf16>, vector<128x128xbf16>, vector<8x128xf32> -> vector<8x128xf32>
    %c0_15 = arith.constant 0 : index
    %c0_16 = arith.constant 0 : index
    %20 = vector.load %arg7[%c0_15, %c0_16] : memref<1x128xf32, #tpu.memory_space<vmem>>, vector<1x128xf32>
    %21 = vector.broadcast %20 : vector<1x128xf32> to vector<8x128xf32>
    %22 = arith.addf %19, %21 : vector<8x128xf32>
    %cst_17 = arith.constant 0.000000e+00 : f32
    %23 = vector.broadcast %cst_17 : f32 to vector<8x128xf32>
    %24 = arith.maximumf %22, %23 : vector<8x128xf32>
    %25 = arith.truncf %24 : vector<8x128xf32> to vector<8x128xbf16>
    %c0_18 = arith.constant 0 : index
    %c0_19 = arith.constant 0 : index
    %26 = vector.load %arg8[%c0_18, %c0_19] : memref<128x256xbf16, #tpu.memory_space<vmem>>, vector<128x256xbf16>
    %cst_20 = arith.constant dense<0.000000e+00> : vector<8x256xf32>
    %27 = tpu.matmul %25, %26, %cst_20 {dimension_numbers = #tpu.dot_dimension_numbers<[1], [0], [0], [1], [0, 0, 1, 1], [], []>} : vector<8x128xbf16>, vector<128x256xbf16>, vector<8x256xf32> -> vector<8x256xf32>
    %c0_21 = arith.constant 0 : index
    %c0_22 = arith.constant 0 : index
    %28 = vector.load %arg9[%c0_21, %c0_22] : memref<1x256xf32, #tpu.memory_space<vmem>>, vector<1x256xf32>
    %29 = vector.broadcast %28 : vector<1x256xf32> to vector<8x256xf32>
    %30 = arith.addf %27, %29 : vector<8x256xf32>
    %31 = math.tanh %30 : vector<8x256xf32>
    %c0_23 = arith.constant 0 : index
    %c0_24 = arith.constant 0 : index
    %32 = vector.load %arg10[%c0_23, %c0_24] : memref<8x256xf32, #tpu.memory_space<vmem>>, vector<8x256xf32>
    tpu.vector_store %arg10[%c0_23, %c0_24], %31 {strides = array<i32>} : memref<8x256xf32, #tpu.memory_space<vmem>>, vector<8x256xf32>,
    return
  }
  func.func @transform_0(%arg0: i32) -> (i32, i32) {
    %c0_i32 = arith.constant 0 : i32
    %c0_i32_0 = arith.constant 0 : i32
    return %arg0, %c0_i32 : i32, i32
  }
  func.func @transform_1(%arg0: i32) -> (i32, i32) {
    %c0_i32 = arith.constant 0 : i32
    %c0_i32_0 = arith.constant 0 : i32
    %c0_i32_1 = arith.constant 0 : i32
    return %c0_i32, %c0_i32_0 : i32, i32
  }
  func.func @transform_2(%arg0: i32) -> (i32, i32) {
    %c0_i32 = arith.constant 0 : i32
    %c0_i32_0 = arith.constant 0 : i32
    %c0_i32_1 = arith.constant 0 : i32
    return %c0_i32, %c0_i32_0 : i32, i32
  }
  func.func @transform_3(%arg0: i32) -> (i32, i32) {
    %c0_i32 = arith.constant 0 : i32
    %c0_i32_0 = arith.constant 0 : i32
    %c0_i32_1 = arith.constant 0 : i32
    return %c0_i32, %c0_i32_0 : i32, i32
  }
  func.func @transform_4(%arg0: i32) -> (i32, i32) {
    %c0_i32 = arith.constant 0 : i32
    %c0_i32_0 = arith.constant 0 : i32
    %c0_i32_1 = arith.constant 0 : i32
    return %c0_i32, %c0_i32_0 : i32, i32
  }
  func.func @transform_5(%arg0: i32) -> (i32, i32) {
    %c0_i32 = arith.constant 0 : i32
    %c0_i32_0 = arith.constant 0 : i32
    %c0_i32_1 = arith.constant 0 : i32
    return %c0_i32, %c0_i32_0 : i32, i32
  }
  func.func @transform_6(%arg0: i32) -> (i32, i32) {
    %c0_i32 = arith.constant 0 : i32
    %c0_i32_0 = arith.constant 0 : i32
    %c0_i32_1 = arith.constant 0 : i32
    return %c0_i32, %c0_i32_0 : i32, i32
  }
  func.func @transform_7(%arg0: i32) -> (i32, i32) {
    %c0_i32 = arith.constant 0 : i32
    %c0_i32_0 = arith.constant 0 : i32
    %c0_i32_1 = arith.constant 0 : i32
    return %c0_i32, %c0_i32_0 : i32, i32
  }
  func.func @transform_8(%arg0: i32) -> (i32, i32) {
    %c0_i32 = arith.constant 0 : i32
    %c0_i32_0 = arith.constant 0 : i32
    %c0_i32_1 = arith.constant 0 : i32
    return %c0_i32, %c0_i32_0 : i32, i32
  }
  func.func @transform_9(%arg0: i32) -> (i32, i32) {
    %c0_i32 = arith.constant 0 : i32
    %c0_i32_0 = arith.constant 0 : i32
    return %arg0, %c0_i32 : i32, i32
  }
}

</mosaic_0001>

<bundles_post_ra>
// kernel: decoder_forward.1
= control target key start
LH: loop header
LB: loop body
LE: loop exit
PB: predicated region body
PF: predicated region fallthrough
CT: control target
= control target key end

     0   :  { %14 = vsyncpa [#allocation3], 0  ;;  %s1059_s0 = inlined_call_operand.vmem [shape: f32[8,128], index: 0, kind: input, shape index: {}]   ;;  %s1060_s1 = inlined_call_operand.hbm [shape: bf16[128,128], index: 1, kind: input, shape index: {}]   ;;  %s1061_s2 = inlined_call_operand.vmem [shape: f32[1,128], index: 2, kind: input, shape index: {}]   ;;  %s1062_s3 = inlined_call_operand.hbm [shape: bf16[128,128], index: 3, kind: input, shape index: {}]   ;;  %s1063_s4 = inlined_call_operand.vmem [shape: f32[1,128], index: 4, kind: input, shape index: {}]   ;;  %s1064_s5 = inlined_call_operand.hbm [shape: bf16[128,128], index: 5, kind: input, shape index: {}]   ;;  %s1065_s6 = inlined_call_operand.vmem [shape: f32[1,128], index: 6, kind: input, shape index: {}]   ;;  %s1066_s7 = inlined_call_operand.hbm [shape: bf16[128,256], index: 7, kind: input, shape index: {}]   ;;  %s1067_s8 = inlined_call_operand.vmem [shape: f32[1,256], index: 8, kind: input, shape index: {}]   ;;  %s1068_s9 = inlined_call_operand.vmem [shape: f32[8,256], index: 9, kind: output, shape index: {}]  }
   0x1   :  { %15 = vsyncpa [#allocation5], 0 }
   0x2   :  { %16 = vsyncpa [#allocation8], 0  ;;  %s876_s30 = smov [#allocation4]   ;;  %s877_s11 = smov [#allocation2]  }
   0x3   :  { %s38_s10 = sshll.u32 %s876_s30, 4  ;;  %s24_s12 = sshll.u32 %s877_s11, 4  ;;  %s39_s10 = int_to_ptr.vmem [resolvable:$true] %s38_s10  ;;  %s937_s12 = int_to_ptr.vmem [resolvable:$true] %s24_s12 }
   0x4   :  { %s782_s15 = scalar_lea.hbm %s1062_s3, 1024 }
   0x5   :  { %p783_p0 = scmp.ne.s32.totalorder %s1062_s3, %s782_s15  ;;  %p786_p1 = scmp.lt.u32.totalorder %s782_s15, %s1062_s3 }
   0x7   :  { %p788_p2 = pnand %p786_p1, %p783_p0 }
   0x9   :  { %791 = shalt.err (!%p788_p2)
}
   0xa   :  { %s792_s20 = scalar_lea.vmem %s39_s10, 1024  ;;  %p797_p4 = scmp.lt.s32.totalorder %s39_s10, %s39_s10 }
   0xb   :  { %p793_p3 = scmp.ne.s32.totalorder %s39_s10, %s792_s20  ;;  %p798_p5 = scmp.lt.s32.totalorder %s792_s20, %s792_s20 }
   0xd   :  { %p799_p6 = por %p798_p5, %p797_p4 }
   0xf   :  { %p800_p7 = pnand %p799_p6, %p793_p3 }
  0x11   :  { %803 = shalt.err (!%p800_p7)
}
  0x12   :  { %s878_s21 = smov 64   ;;  %s879_s22 = smov 4  }
  0x13   :  { %44 = dma.hbm_to_vmem [thread:$0]  %s1062_s3, 1024, %s39_s10, [#allocation5], %s878_s21, %s878_s21, %s879_s22  }
  0x14   :  { %s804_s27 = scalar_lea.hbm %s1060_s1, 1024 }
  0x15   :  { %p805_p8 = scmp.ne.s32.totalorder %s1060_s1, %s804_s27  ;;  %p808_p9 = scmp.lt.u32.totalorder %s804_s27, %s1060_s1 }
  0x17   :  { %p810_p10 = pnand %p808_p9, %p805_p8 }
  0x19   :  { %813 = shalt.err (!%p810_p10)
}
  0x1a   :  { %s814_s13 = scalar_lea.vmem %s937_s12, 1024  ;;  %p819_p12 = scmp.lt.s32.totalorder %s937_s12, %s937_s12 }
  0x1b   :  { %p815_p11 = scmp.ne.s32.totalorder %s937_s12, %s814_s13  ;;  %p820_p13 = scmp.lt.s32.totalorder %s814_s13, %s814_s13 }
  0x1d   :  { %p821_p0 = por %p820_p13, %p819_p12 }
  0x1f   :  { %p822_p1 = pnand %p821_p0, %p815_p11 }
  0x21   :  { %825 = shalt.err (!%p822_p1)
}
  0x22   :  { %30 = dma.hbm_to_vmem [thread:$0]  %s1060_s1, 1024, %s937_s12, [#allocation3], %s878_s21, %s878_s21, %s879_s22  }
  0x23   :  { %s880_s14 = smov [#allocation6]   ;;  %s881_s16 = smov [#allocation7]  }
  0x24   :  { %s52_s15 = sshll.u32 %s880_s14, 4  ;;  %s66_s17 = sshll.u32 %s881_s16, 4  ;;  %s53_s15 = int_to_ptr.vmem [resolvable:$true] %s52_s15  ;;  %s974_s17 = int_to_ptr.vmem [resolvable:$true] %s66_s17 }
  0x25   :  { %s826_s20 = scalar_lea.hbm %s1064_s5, 1024 }
  0x26   :  { %p827_p2 = scmp.ne.s32.totalorder %s1064_s5, %s826_s20  ;;  %p830_p3 = scmp.lt.u32.totalorder %s826_s20, %s1064_s5 }
  0x28   :  { %p832_p4 = pnand %p830_p3, %p827_p2 }
  0x2a   :  { %835 = shalt.err (!%p832_p4)
}
  0x2b   :  { %s836_s1 = scalar_lea.vmem %s53_s15, 1024  ;;  %p841_p6 = scmp.lt.s32.totalorder %s53_s15, %s53_s15 }
  0x2c   :  { %p837_p5 = scmp.ne.s32.totalorder %s53_s15, %s836_s1  ;;  %p842_p7 = scmp.lt.s32.totalorder %s836_s1, %s836_s1 }
  0x2e   :  { %p843_p8 = por %p842_p7, %p841_p6 }
  0x30   :  { %p844_p9 = pnand %p843_p8, %p837_p5 }
  0x32   :  { %847 = shalt.err (!%p844_p9)
}
  0x33   :  { %58 = dma.hbm_to_vmem [thread:$0]  %s1064_s5, 1024, %s53_s15, [#allocation5], %s878_s21, %s878_s21, %s879_s22  }
  0x34   :  { %s848_s30 = scalar_lea.hbm %s1066_s7, 2048 }
  0x35   :  { %p849_p10 = scmp.ne.s32.totalorder %s1066_s7, %s848_s30  ;;  %p852_p11 = scmp.lt.u32.totalorder %s848_s30, %s1066_s7 }
  0x37   :  { %p854_p12 = pnand %p852_p11, %p849_p10 }
  0x39   :  { %857 = shalt.err (!%p854_p12)
}
  0x3a   :  { %s858_s14 = scalar_lea.vmem %s974_s17, 2048  ;;  %p863_p0 = scmp.lt.s32.totalorder %s974_s17, %s974_s17 }
  0x3b   :  { %p859_p13 = scmp.ne.s32.totalorder %s974_s17, %s858_s14  ;;  %p864_p1 = scmp.lt.s32.totalorder %s858_s14, %s858_s14 }
  0x3d   :  { %p865_p2 = por %p864_p1, %p863_p0 }
  0x3f   :  { %p866_p3 = pnand %p865_p2, %p859_p13 }
  0x41   :  { %869 = shalt.err (!%p866_p3)
}
  0x42   :  { %s882_s5 = smov 128   ;;  %s883_s21 = smov 8  }
  0x43   :  { %72 = dma.hbm_to_vmem [thread:$0]  %s1066_s7, 2048, %s974_s17, [#allocation8], %s882_s5, %s882_s5, %s883_s21  }
  0x44   :  { %870 = dma.done.wait [#allocation3], 1024  }
  0x45   :  { %871 = vsyncadd [#allocation3], 4294966272 }
  0x46   :  { %872 = dma.done.wait [#allocation5], 2048  }
  0x47   :  { %873 = vsyncadd [#allocation5], 4294965248 }
  0x48   :  { %874 = dma.done.wait [#allocation8], 2048  }
  0x49   :  { %875 = vsyncadd [#allocation8], 4294965248  ;;  %v884_v0 = vmov 0.0   ;;  %vm885_vm0 = vmmov 0   ;;  %v730_v1 = vld [vmem:[#allocation2] sm:$0xff]   ;;  %v731_v2 = vld [vmem:[#allocation2 + $0x8] sm:$0xff]  }
  0x4a   :  { %659 = vmatprep.subr.bf16.mxu0 %v884_v0  ;;  %675 = vmatprep.mubr.msk.bf16.mxu0 %vm885_vm0, %v884_v0  ;;  %v732_v3 = vld [vmem:[#allocation2 + $0x10] sm:$0xff]   ;;  %v738_v4 = vld [vmem:[#allocation4] sm:$0xff]   ;;  %v733_v5 = vld [vmem:[#allocation2 + $0x18] sm:$0xff]   ;;  %v886_v59 = vmov 0  }
  0x4b   :  { %679 = vmatprep.subr.bf16.mxu1 %v884_v0  ;;  %695 = vmatprep.mubr.msk.bf16.mxu1 %vm885_vm0, %v884_v0  ;;  %v739_v6 = vld [vmem:[#allocation4 + $0x8] sm:$0xff]   ;;  %v734_v7 = vld [vmem:[#allocation2 + $0x20] sm:$0xff]   ;;  %v740_v8 = vld [vmem:[#allocation4 + $0x10] sm:$0xff]  }
  0x4c   :  { %660 = vmatpush3.bf16.msra.mxu0 %v730_v1  ;;  %680 = vmatpush3.bf16.msra.mxu1 %v738_v4  ;;  %v735_v9 = vld [vmem:[#allocation2 + $0x28] sm:$0xff]   ;;  %v741_v10 = vld [vmem:[#allocation4 + $0x18] sm:$0xff]   ;;  %v736_v11 = vld [vmem:[#allocation2 + $0x30] sm:$0xff]   ;;  %v447_v4 = vlaneseq }
  0x4d   :  { %661 = vmatprep.subr.bf16.mxu0 %v884_v0  ;;  %681 = vmatprep.subr.bf16.mxu1 %v884_v0  ;;  %v742_v12 = vld [vmem:[#allocation4 + $0x20] sm:$0xff]   ;;  %v737_v13 = vld [vmem:[#allocation2 + $0x38] sm:$0xff]   ;;  %v743_v15 = vld [vmem:[#allocation4 + $0x28] sm:$0xff]  }
  0x4e   :  { %v88_v14 = vld [vmem:[%s1059_s0] sm:$0xff]  ;;  %v744_v17 = vld [vmem:[#allocation4 + $0x30] sm:$0xff]   ;;  %v745_v18 = vld [vmem:[#allocation4 + $0x38] sm:$0xff]  }
  0x4f   :  { %v89_v16 = vpack.c.bf16 %v88_v14, %v88_v14  ;;  %v746_v19 = vld [vmem:[#allocation6] sm:$0xff]   ;;  %v747_v20 = vld [vmem:[#allocation6 + $0x8] sm:$0xff]   ;;  %v748_v21 = vld [vmem:[#allocation6 + $0x10] sm:$0xff]  }
  0x50   :  { %662 = vmatpush3.bf16.msra.mxu0 %v731_v2  ;;  %682 = vmatpush3.bf16.msra.mxu1 %v739_v6  ;;  %v749_v22 = vld [vmem:[#allocation6 + $0x18] sm:$0xff]   ;;  %v750_v23 = vld [vmem:[#allocation6 + $0x20] sm:$0xff]   ;;  %v751_v24 = vld [vmem:[#allocation6 + $0x28] sm:$0xff]  }
  0x51   :  { %663 = vmatprep.subr.bf16.mxu0 %v884_v0  ;;  %683 = vmatprep.subr.bf16.mxu1 %v884_v0  ;;  %v589_v25 = vld [vmem:[%s1061_s2] ss:$0 sm:$0xff]  ;;  %v752_v33 = vld [vmem:[#allocation6 + $0x30] sm:$0xff]   ;;  %v753_v34 = vld [vmem:[#allocation6 + $0x38] sm:$0xff]  }
  0x52   :  { %v754_v35 = vld [vmem:[#allocation7] ss:$8 sps:$4 sm:$0xff]   ;;  %v756_v36 = vld [vmem:[#allocation7 + $0x4] ss:$8 sps:$4 sm:$0xff]   ;;  %v759_v37 = vld [vmem:[#allocation7 + $0x14] ss:$8 sps:$4 sm:$0xff]  }
  0x53   :  { %v757_v38 = vld [vmem:[#allocation7 + $0x10] ss:$8 sps:$4 sm:$0xff]   ;;  %v762_v39 = vld [vmem:[#allocation7 + $0x24] ss:$8 sps:$4 sm:$0xff]   ;;  %v760_v40 = vld [vmem:[#allocation7 + $0x20] ss:$8 sps:$4 sm:$0xff]  }
  0x54   :  { %664 = vmatpush3.bf16.msra.mxu0 %v732_v3  ;;  %684 = vmatpush3.bf16.msra.mxu1 %v740_v8  ;;  %v765_v41 = vld [vmem:[#allocation7 + $0x34] ss:$8 sps:$4 sm:$0xff]   ;;  %v763_v42 = vld [vmem:[#allocation7 + $0x30] ss:$8 sps:$4 sm:$0xff]   ;;  %v768_v43 = vld [vmem:[#allocation7 + $0x44] ss:$8 sps:$4 sm:$0xff]  }
  0x55   :  { %665 = vmatprep.subr.bf16.mxu0 %v884_v0  ;;  %685 = vmatprep.subr.bf16.mxu1 %v884_v0  ;;  %v766_v44 = vld [vmem:[#allocation7 + $0x40] ss:$8 sps:$4 sm:$0xff]   ;;  %v771_v45 = vld [vmem:[#allocation7 + $0x54] ss:$8 sps:$4 sm:$0xff]   ;;  %v769_v46 = vld [vmem:[#allocation7 + $0x50] ss:$8 sps:$4 sm:$0xff]  }
  0x56   :  { %v774_v47 = vld [vmem:[#allocation7 + $0x64] ss:$8 sps:$4 sm:$0xff]   ;;  %v772_v48 = vld [vmem:[#allocation7 + $0x60] ss:$8 sps:$4 sm:$0xff]   ;;  %v777_v57 = vld [vmem:[#allocation7 + $0x74] ss:$8 sps:$4 sm:$0xff]  }
  0x57   :  { %v598_v49 = vld [vmem:[%s1063_s4] ss:$0 sm:$0xff]  ;;  %v775_v58 = vld [vmem:[#allocation7 + $0x70] ss:$8 sps:$4 sm:$0xff]  }
  0x58   :  { %666 = vmatpush3.bf16.msra.mxu0 %v733_v5  ;;  %686 = vmatpush3.bf16.msra.mxu1 %v741_v10  ;;  %v607_v60 = vld [vmem:[%s1065_s6] ss:$0 sm:$0xff]  ;;  %v448_v5 = vshrl.u32 %v447_v4, 7 }
  0x59   :  { %667 = vmatprep.subr.bf16.mxu0 %v884_v0  ;;  %687 = vmatprep.subr.bf16.mxu1 %v884_v0 }
  0x5a   :  { %v449_v6 = vsub.s32 0, %v448_v5  ;;  %v453_v8 = vsub.s32 1, %v448_v5 }
  0x5c   :  { %668 = vmatpush3.bf16.msra.mxu0 %v734_v7  ;;  %688 = vmatpush3.bf16.msra.mxu1 %v742_v12  ;;  %v445_v7 = vld [vmem:[%s1067_s8] sm:$0x3] }
  0x5d   :  { %669 = vmatprep.subr.bf16.mxu0 %v884_v0  ;;  %689 = vmatprep.subr.bf16.mxu1 %v884_v0  ;;  %v454_v10 = vrot.slane %v445_v7, %v453_v8 }
  0x60   :  { %670 = vmatpush3.bf16.msra.mxu0 %v735_v9  ;;  %690 = vmatpush3.bf16.msra.mxu1 %v743_v15  ;;  %v450_v9 = vrot.slane %v445_v7, %v449_v6 }
  0x61   :  { %671 = vmatprep.subr.bf16.mxu0 %v884_v0  ;;  %691 = vmatprep.subr.bf16.mxu1 %v884_v0 }
  0x64   :  { %672 = vmatpush3.bf16.msra.mxu0 %v736_v11  ;;  %692 = vmatpush3.bf16.msra.mxu1 %v744_v17 }
  0x65   :  { %673 = vmatprep.subr.bf16.mxu0 %v884_v0  ;;  %693 = vmatprep.subr.bf16.mxu1 %v884_v0 }
  0x68   :  { %674 = vmatpush3.bf16.msra.mxu0 %v737_v13  ;;  %694 = vmatpush3.bf16.msra.mxu1 %v745_v18 }
  0x69   :  { %699 = vmatprep.subr.bf16.mxu0 %v884_v0  ;;  %537 = vmatprep.subr.bf16.mxu1 %v756_v36 }
  0x6b   :  { %676 = vmatmul.mubr.bf16.vlgmr.msra.gmra.mrb[0].mxu0 %v89_v16 }
  0x6c   :  { %715 = vmatprep.mubr.msk.bf16.mxu0 %vm885_vm0, %v884_v0  ;;  %700 = vmatpush3.bf16.msra.mxu0 %v746_v19 }
  0x6d   :  { %701 = vmatprep.subr.bf16.mxu0 %v884_v0 }
  0x70   :  { %702 = vmatpush3.bf16.msra.mxu0 %v747_v20 }
  0x71   :  { %703 = vmatprep.subr.bf16.mxu0 %v884_v0 }
  0x74   :  { %704 = vmatpush3.bf16.msra.mxu0 %v748_v21 }
  0x75   :  { %705 = vmatprep.subr.bf16.mxu0 %v884_v0 }
  0x78   :  { %706 = vmatpush3.bf16.msra.mxu0 %v749_v22 }
  0x79   :  { %707 = vmatprep.subr.bf16.mxu0 %v884_v0 }
  0x7c   :  { %708 = vmatpush3.bf16.msra.mxu0 %v750_v23 }
  0x7d   :  { %709 = vmatprep.subr.bf16.mxu0 %v884_v0 }
  0x80   :  { %710 = vmatpush3.bf16.msra.mxu0 %v751_v24 }
  0x81   :  { %711 = vmatprep.subr.bf16.mxu0 %v884_v0 }
  0x84   :  { %712 = vmatpush3.bf16.msra.mxu0 %v752_v33 }
  0x85   :  { %713 = vmatprep.subr.bf16.mxu0 %v884_v0 }
  0x88   :  { %714 = vmatpush3.bf16.msra.mxu0 %v753_v34 }
 0x13e   :  { %v195_v26 = vpop.f32.mrb[0].mxu0 }
 0x13f   :  { %v196_v27 = vadd.f32 %v589_v25, %v195_v26  ;;  %v677_v28 = vpop.f32.mrb[1].mxu0 }
 0x140   :  { %v198_v29 = vpop.f32.mrb[2].mxu0 }
 0x141   :  { %v201_v30 = vmax.f32 %v196_v27, 0.0  ;;  %v678_v31 = vpop.f32.mrb[3].mxu0 }
 0x143   :  { %v202_v32 = vpack.c.bf16 %v201_v30, %v201_v30 }
 0x145   :  { %696 = vmatmul.mubr.bf16.vlgmr.msra.gmra.mrb[0].mxu1 %v202_v32 }
 0x146   :  { %538 = vmatpush1.bf16.msra.mxu1 %v754_v35  ;;  %569 = vmatprep.mubr.bf16.mxu1 %v886_v59 }
 0x147   :  { %539 = vmatprep.subr.bf16.mxu1 %v759_v37 }
 0x14a   :  { %540 = vmatpush1.bf16.msra.mxu1 %v757_v38 }
 0x14b   :  { %541 = vmatprep.subr.bf16.mxu1 %v762_v39 }
 0x14e   :  { %542 = vmatpush1.bf16.msra.mxu1 %v760_v40 }
 0x14f   :  { %543 = vmatprep.subr.bf16.mxu1 %v765_v41 }
 0x152   :  { %544 = vmatpush1.bf16.msra.mxu1 %v763_v42 }
 0x153   :  { %545 = vmatprep.subr.bf16.mxu1 %v768_v43 }
 0x156   :  { %546 = vmatpush1.bf16.msra.mxu1 %v766_v44 }
 0x157   :  { %547 = vmatprep.subr.bf16.mxu1 %v771_v45 }
 0x15a   :  { %548 = vmatpush1.bf16.msra.mxu1 %v769_v46 }
 0x15b   :  { %549 = vmatprep.subr.bf16.mxu1 %v774_v47 }
 0x15e   :  { %550 = vmatpush1.bf16.msra.mxu1 %v772_v48 }
 0x15f   :  { %551 = vmatprep.subr.bf16.mxu1 %v777_v57 }
 0x162   :  { %552 = vmatpush1.bf16.msra.mxu1 %v775_v58 }
 0x218   :  { %v308_v50 = vpop.f32.mrb[0].mxu1 }
 0x219   :  { %v309_v51 = vadd.f32 %v598_v49, %v308_v50  ;;  %v697_v52 = vpop.f32.mrb[1].mxu1 }
 0x21a   :  { %v311_v53 = vpop.f32.mrb[2].mxu1 }
 0x21b   :  { %v314_v54 = vmax.f32 %v309_v51, 0.0  ;;  %v698_v55 = vpop.f32.mrb[3].mxu1 }
 0x21d   :  { %v315_v56 = vpack.c.bf16 %v314_v54, %v314_v54 }
 0x21f   :  { %716 = vmatmul.mubr.bf16.vlgmr.msra.gmra.mrb[4].mxu0 %v315_v56 }
 0x2f2   :  { %v421_v61 = vpop.f32.mrb[4].mxu0 }
 0x2f3   :  { %v422_v62 = vadd.f32 %v607_v60, %v421_v61  ;;  %v717_v63 = vpop.f32.mrb[5].mxu0 }
 0x2f4   :  { %v424_v0 = vpop.f32.mrb[6].mxu0 }
 0x2f5   :  { %v427_v1 = vmax.f32 %v422_v62, 0.0  ;;  %v718_v2 = vpop.f32.mrb[7].mxu0 }
 0x2f7   :  { %v428_v3 = vpack.c.bf16 %v427_v1, %v427_v1 }
 0x2f9   :  { %570 = vmatmul.mubr.bf16.vlgmr.msra.gmra.mrb[4].mxu1 %v428_v3 }
 0x3cc   :  { %v571_v11 = vpop.f32.mrb[4].mxu1 }
 0x3cd   :  { %v572_v12 = vadd.f32 %v571_v11, %v450_v9  ;;  %v573_v13 = vpop.f32.mrb[5].mxu1 }
 0x3ce   :  { %v574_v14 = vadd.f32 %v573_v13, %v454_v10  ;;  %v575_v15 = vpop.f32.mrb[6].mxu1 }
 0x3cf   :  { %778 = vtanh.f32 %v572_v12  ;;  %v576_v16 = vpop.f32.mrb[7].mxu1 }
 0x3d0   :  { %780 = vtanh.f32 %v574_v14 }
 0x3d9   :  { %v779_v17 = vpop.eup %778 }
 0x3da   :  { %v781_v18 = vpop.eup %780  ;;  %580 = vst [vmem:[%s1068_s9] sm:$0xff] %v779_v17 }
 0x3db   :  { %581 = vst [vmem:[%s1068_s9 + $0x8] sm:$0xff] %v781_v18 }
 0x3dc   :  { %586 = vsyncpa [#allocation3], 1 }
 0x3dd   :  { %587 = vsyncpa [#allocation5], 1 }
 0x3de   :  { %588 = vsyncpa [#allocation8], 1 }

// kernel: decoder_forward.1
= control target key start
LH: loop header
LB: loop body
LE: loop exit
PB: predicated region body
PF: predicated region fallthrough
CT: control target
= control target key end

     0   :  { %14 = vsyncpa [#allocation3], 0  ;;  %s1059_s0 = inlined_call_operand.vmem [shape: f32[8,128], index: 0, kind: input, shape index: {}]   ;;  %s1060_s1 = inlined_call_operand.hbm [shape: bf16[128,128], index: 1, kind: input, shape index: {}]   ;;  %s1061_s2 = inlined_call_operand.vmem [shape: f32[1,128], index: 2, kind: input, shape index: {}]   ;;  %s1062_s3 = inlined_call_operand.hbm [shape: bf16[128,128], index: 3, kind: input, shape index: {}]   ;;  %s1063_s4 = inlined_call_operand.vmem [shape: f32[1,128], index: 4, kind: input, shape index: {}]   ;;  %s1064_s5 = inlined_call_operand.hbm [shape: bf16[128,128], index: 5, kind: input, shape index: {}]   ;;  %s1065_s6 = inlined_call_operand.vmem [shape: f32[1,128], index: 6, kind: input, shape index: {}]   ;;  %s1066_s7 = inlined_call_operand.hbm [shape: bf16[128,256], index: 7, kind: input, shape index: {}]   ;;  %s1067_s8 = inlined_call_operand.vmem [shape: f32[1,256], index: 8, kind: input, shape index: {}]   ;;  %s1068_s9 = inlined_call_operand.vmem [shape: f32[8,256], index: 9, kind: output, shape index: {}]  }
   0x1   :  { %15 = vsyncpa [#allocation5], 0 }
   0x2   :  { %16 = vsyncpa [#allocation8], 0  ;;  %s876_s30 = smov [#allocation4]   ;;  %s877_s11 = smov [#allocation2]  }
   0x3   :  { %s38_s10 = sshll.u32 %s876_s30, 4  ;;  %s24_s12 = sshll.u32 %s877_s11, 4  ;;  %s39_s10 = int_to_ptr.vmem [resolvable:$true] %s38_s10  ;;  %s937_s12 = int_to_ptr.vmem [resolvable:$true] %s24_s12 }
   0x4   :  { %s782_s15 = scalar_lea.hbm %s1062_s3, 1024 }
   0x5   :  { %p783_p0 = scmp.ne.s32.totalorder %s1062_s3, %s782_s15  ;;  %p786_p1 = scmp.lt.u32.totalorder %s782_s15, %s1062_s3 }
   0x7   :  { %p788_p2 = pnand %p786_p1, %p783_p0 }
   0x9   :  { %791 = shalt.err (!%p788_p2)
}
   0xa   :  { %s792_s20 = scalar_lea.vmem %s39_s10, 1024  ;;  %p797_p4 = scmp.lt.s32.totalorder %s39_s10, %s39_s10 }
   0xb   :  { %p793_p3 = scmp.ne.s32.totalorder %s39_s10, %s792_s20  ;;  %p798_p5 = scmp.lt.s32.totalorder %s792_s20, %s792_s20 }
   0xd   :  { %p799_p6 = por %p798_p5, %p797_p4 }
   0xf   :  { %p800_p7 = pnand %p799_p6, %p793_p3 }
  0x11   :  { %803 = shalt.err (!%p800_p7)
}
  0x12   :  { %s878_s21 = smov 64   ;;  %s879_s22 = smov 4  }
  0x13   :  { %44 = dma.hbm_to_vmem [thread:$0]  %s1062_s3, 1024, %s39_s10, [#allocation5], %s878_s21, %s878_s21, %s879_s22  }
  0x14   :  { %s804_s27 = scalar_lea.hbm %s1060_s1, 1024 }
  0x15   :  { %p805_p8 = scmp.ne.s32.totalorder %s1060_s1, %s804_s27  ;;  %p808_p9 = scmp.lt.u32.totalorder %s804_s27, %s1060_s1 }
  0x17   :  { %p810_p10 = pnand %p808_p9, %p805_p8 }
  0x19   :  { %813 = shalt.err (!%p810_p10)
}
  0x1a   :  { %s814_s13 = scalar_lea.vmem %s937_s12, 1024  ;;  %p819_p12 = scmp.lt.s32.totalorder %s937_s12, %s937_s12 }
  0x1b   :  { %p815_p11 = scmp.ne.s32.totalorder %s937_s12, %s814_s13  ;;  %p820_p13 = scmp.lt.s32.totalorder %s814_s13, %s814_s13 }
  0x1d   :  { %p821_p0 = por %p820_p13, %p819_p12 }
  0x1f   :  { %p822_p1 = pnand %p821_p0, %p815_p11 }
  0x21   :  { %825 = shalt.err (!%p822_p1)
}
  0x22   :  { %30 = dma.hbm_to_vmem [thread:$0]  %s1060_s1, 1024, %s937_s12, [#allocation3], %s878_s21, %s878_s21, %s879_s22  }
  0x23   :  { %s880_s14 = smov [#allocation6]   ;;  %s881_s16 = smov [#allocation7]  }
  0x24   :  { %s52_s15 = sshll.u32 %s880_s14, 4  ;;  %s66_s17 = sshll.u32 %s881_s16, 4  ;;  %s53_s15 = int_to_ptr.vmem [resolvable:$true] %s52_s15  ;;  %s974_s17 = int_to_ptr.vmem [resolvable:$true] %s66_s17 }
  0x25   :  { %s826_s20 = scalar_lea.hbm %s1064_s5, 1024 }
  0x26   :  { %p827_p2 = scmp.ne.s32.totalorder %s1064_s5, %s826_s20  ;;  %p830_p3 = scmp.lt.u32.totalorder %s826_s20, %s1064_s5 }
  0x28   :  { %p832_p4 = pnand %p830_p3, %p827_p2 }
  0x2a   :  { %835 = shalt.err (!%p832_p4)
}
  0x2b   :  { %s836_s1 = scalar_lea.vmem %s53_s15, 1024  ;;  %p841_p6 = scmp.lt.s32.totalorder %s53_s15, %s53_s15 }
  0x2c   :  { %p837_p5 = scmp.ne.s32.totalorder %s53_s15, %s836_s1  ;;  %p842_p7 = scmp.lt.s32.totalorder %s836_s1, %s836_s1 }
  0x2e   :  { %p843_p8 = por %p842_p7, %p841_p6 }
  0x30   :  { %p844_p9 = pnand %p843_p8, %p837_p5 }
  0x32   :  { %847 = shalt.err (!%p844_p9)
}
  0x33   :  { %58 = dma.hbm_to_vmem [thread:$0]  %s1064_s5, 1024, %s53_s15, [#allocation5], %s878_s21, %s878_s21, %s879_s22  }
  0x34   :  { %s848_s30 = scalar_lea.hbm %s1066_s7, 2048 }
  0x35   :  { %p849_p10 = scmp.ne.s32.totalorder %s1066_s7, %s848_s30  ;;  %p852_p11 = scmp.lt.u32.totalorder %s848_s30, %s1066_s7 }
  0x37   :  { %p854_p12 = pnand %p852_p11, %p849_p10 }
  0x39   :  { %857 = shalt.err (!%p854_p12)
}
  0x3a   :  { %s858_s14 = scalar_lea.vmem %s974_s17, 2048  ;;  %p863_p0 = scmp.lt.s32.totalorder %s974_s17, %s974_s17 }
  0x3b   :  { %p859_p13 = scmp.ne.s32.totalorder %s974_s17, %s858_s14  ;;  %p864_p1 = scmp.lt.s32.totalorder %s858_s14, %s858_s14 }
  0x3d   :  { %p865_p2 = por %p864_p1, %p863_p0 }
  0x3f   :  { %p866_p3 = pnand %p865_p2, %p859_p13 }
  0x41   :  { %869 = shalt.err (!%p866_p3)
}
  0x42   :  { %s882_s5 = smov 128   ;;  %s883_s21 = smov 8  }
  0x43   :  { %72 = dma.hbm_to_vmem [thread:$0]  %s1066_s7, 2048, %s974_s17, [#allocation8], %s882_s5, %s882_s5, %s883_s21  }
  0x44   :  { %870 = dma.done.wait [#allocation3], 1024  }
  0x45   :  { %871 = vsyncadd [#allocation3], 4294966272 }
  0x46   :  { %872 = dma.done.wait [#allocation5], 2048  }
  0x47   :  { %873 = vsyncadd [#allocation5], 4294965248 }
  0x48   :  { %874 = dma.done.wait [#allocation8], 2048  }
  0x49   :  { %875 = vsyncadd [#allocation8], 4294965248  ;;  %v884_v0 = vmov 0.0   ;;  %vm885_vm0 = vmmov 0   ;;  %v730_v1 = vld [vmem:[#allocation2] sm:$0xff]   ;;  %v731_v2 = vld [vmem:[#allocation2 + $0x8] sm:$0xff]  }
  0x4a   :  { %659 = vmatprep.subr.bf16.mxu0 %v884_v0  ;;  %675 = vmatprep.mubr.msk.bf16.mxu0 %vm885_vm0, %v884_v0  ;;  %v732_v3 = vld [vmem:[#allocation2 + $0x10] sm:$0xff]   ;;  %v738_v4 = vld [vmem:[#allocation4] sm:$0xff]   ;;  %v733_v5 = vld [vmem:[#allocation2 + $0x18] sm:$0xff]   ;;  %v886_v59 = vmov 0  }
  0x4b   :  { %679 = vmatprep.subr.bf16.mxu1 %v884_v0  ;;  %695 = vmatprep.mubr.msk.bf16.mxu1 %vm885_vm0, %v884_v0  ;;  %v739_v6 = vld [vmem:[#allocation4 + $0x8] sm:$0xff]   ;;  %v734_v7 = vld [vmem:[#allocation2 + $0x20] sm:$0xff]   ;;  %v740_v8 = vld [vmem:[#allocation4 + $0x10] sm:$0xff]  }
  0x4c   :  { %660 = vmatpush3.bf16.msra.mxu0 %v730_v1  ;;  %680 = vmatpush3.bf16.msra.mxu1 %v738_v4  ;;  %v735_v9 = vld [vmem:[#allocation2 + $0x28] sm:$0xff]   ;;  %v741_v10 = vld [vmem:[#allocation4 + $0x18] sm:$0xff]   ;;  %v736_v11 = vld [vmem:[#allocation2 + $0x30] sm:$0xff]   ;;  %v447_v4 = vlaneseq }
  0x4d   :  { %661 = vmatprep.subr.bf16.mxu0 %v884_v0  ;;  %681 = vmatprep.subr.bf16.mxu1 %v884_v0  ;;  %v742_v12 = vld [vmem:[#allocation4 + $0x20] sm:$0xff]   ;;  %v737_v13 = vld [vmem:[#allocation2 + $0x38] sm:$0xff]   ;;  %v743_v15 = vld [vmem:[#allocation4 + $0x28] sm:$0xff]  }
  0x4e   :  { %v88_v14 = vld [vmem:[%s1059_s0] sm:$0xff]  ;;  %v744_v17 = vld [vmem:[#allocation4 + $0x30] sm:$0xff]   ;;  %v745_v18 = vld [vmem:[#allocation4 + $0x38] sm:$0xff]  }
  0x4f   :  { %v89_v16 = vpack.c.bf16 %v88_v14, %v88_v14  ;;  %v746_v19 = vld [vmem:[#allocation6] sm:$0xff]   ;;  %v747_v20 = vld [vmem:[#allocation6 + $0x8] sm:$0xff]   ;;  %v748_v21 = vld [vmem:[#allocation6 + $0x10] sm:$0xff]  }
  0x50   :  { %662 = vmatpush3.bf16.msra.mxu0 %v731_v2  ;;  %682 = vmatpush3.bf16.msra.mxu1 %v739_v6  ;;  %v749_v22 = vld [vmem:[#allocation6 + $0x18] sm:$0xff]   ;;  %v750_v23 = vld [vmem:[#allocation6 + $0x20] sm:$0xff]   ;;  %v751_v24 = vld [vmem:[#allocation6 + $0x28] sm:$0xff]  }
  0x51   :  { %663 = vmatprep.subr.bf16.mxu0 %v884_v0  ;;  %683 = vmatprep.subr.bf16.mxu1 %v884_v0  ;;  %v589_v25 = vld [vmem:[%s1061_s2] ss:$0 sm:$0xff]  ;;  %v752_v33 = vld [vmem:[#allocation6 + $0x30] sm:$0xff]   ;;  %v753_v34 = vld [vmem:[#allocation6 + $0x38] sm:$0xff]  }
  0x52   :  { %v754_v35 = vld [vmem:[#allocation7] ss:$8 sps:$4 sm:$0xff]   ;;  %v756_v36 = vld [vmem:[#allocation7 + $0x4] ss:$8 sps:$4 sm:$0xff]   ;;  %v759_v37 = vld [vmem:[#allocation7 + $0x14] ss:$8 sps:$4 sm:$0xff]  }
  0x53   :  { %v757_v38 = vld [vmem:[#allocation7 + $0x10] ss:$8 sps:$4 sm:$0xff]   ;;  %v762_v39 = vld [vmem:[#allocation7 + $0x24] ss:$8 sps:$4 sm:$0xff]   ;;  %v760_v40 = vld [vmem:[#allocation7 + $0x20] ss:$8 sps:$4 sm:$0xff]  }
  0x54   :  { %664 = vmatpush3.bf16.msra.mxu0 %v732_v3  ;;  %684 = vmatpush3.bf16.msra.mxu1 %v740_v8  ;;  %v765_v41 = vld [vmem:[#allocation7 + $0x34] ss:$8 sps:$4 sm:$0xff]   ;;  %v763_v42 = vld [vmem:[#allocation7 + $0x30] ss:$8 sps:$4 sm:$0xff]   ;;  %v768_v43 = vld [vmem:[#allocation7 + $0x44] ss:$8 sps:$4 sm:$0xff]  }
  0x55   :  { %665 = vmatprep.subr.bf16.mxu0 %v884_v0  ;;  %685 = vmatprep.subr.bf16.mxu1 %v884_v0  ;;  %v766_v44 = vld [vmem:[#allocation7 + $0x40] ss:$8 sps:$4 sm:$0xff]   ;;  %v771_v45 = vld [vmem:[#allocation7 + $0x54] ss:$8 sps:$4 sm:$0xff]   ;;  %v769_v46 = vld [vmem:[#allocation7 + $0x50] ss:$8 sps:$4 sm:$0xff]  }
  0x56   :  { %v774_v47 = vld [vmem:[#allocation7 + $0x64] ss:$8 sps:$4 sm:$0xff]   ;;  %v772_v48 = vld [vmem:[#allocation7 + $0x60] ss:$8 sps:$4 sm:$0xff]   ;;  %v777_v57 = vld [vmem:[#allocation7 + $0x74] ss:$8 sps:$4 sm:$0xff]  }
  0x57   :  { %v598_v49 = vld [vmem:[%s1063_s4] ss:$0 sm:$0xff]  ;;  %v775_v58 = vld [vmem:[#allocation7 + $0x70] ss:$8 sps:$4 sm:$0xff]  }
  0x58   :  { %666 = vmatpush3.bf16.msra.mxu0 %v733_v5  ;;  %686 = vmatpush3.bf16.msra.mxu1 %v741_v10  ;;  %v607_v60 = vld [vmem:[%s1065_s6] ss:$0 sm:$0xff]  ;;  %v448_v5 = vshrl.u32 %v447_v4, 7 }
  0x59   :  { %667 = vmatprep.subr.bf16.mxu0 %v884_v0  ;;  %687 = vmatprep.subr.bf16.mxu1 %v884_v0 }
  0x5a   :  { %v449_v6 = vsub.s32 0, %v448_v5  ;;  %v453_v8 = vsub.s32 1, %v448_v5 }
  0x5c   :  { %668 = vmatpush3.bf16.msra.mxu0 %v734_v7  ;;  %688 = vmatpush3.bf16.msra.mxu1 %v742_v12  ;;  %v445_v7 = vld [vmem:[%s1067_s8] sm:$0x3] }
  0x5d   :  { %669 = vmatprep.subr.bf16.mxu0 %v884_v0  ;;  %689 = vmatprep.subr.bf16.mxu1 %v884_v0  ;;  %v454_v10 = vrot.slane %v445_v7, %v453_v8 }
  0x60   :  { %670 = vmatpush3.bf16.msra.mxu0 %v735_v9  ;;  %690 = vmatpush3.bf16.msra.mxu1 %v743_v15  ;;  %v450_v9 = vrot.slane %v445_v7, %v449_v6 }
  0x61   :  { %671 = vmatprep.subr.bf16.mxu0 %v884_v0  ;;  %691 = vmatprep.subr.bf16.mxu1 %v884_v0 }
  0x64   :  { %672 = vmatpush3.bf16.msra.mxu0 %v736_v11  ;;  %692 = vmatpush3.bf16.msra.mxu1 %v744_v17 }
  0x65   :  { %673 = vmatprep.subr.bf16.mxu0 %v884_v0  ;;  %693 = vmatprep.subr.bf16.mxu1 %v884_v0 }
  0x68   :  { %674 = vmatpush3.bf16.msra.mxu0 %v737_v13  ;;  %694 = vmatpush3.bf16.msra.mxu1 %v745_v18 }
  0x69   :  { %699 = vmatprep.subr.bf16.mxu0 %v884_v0  ;;  %537 = vmatprep.subr.bf16.mxu1 %v756_v36 }
  0x6b   :  { %676 = vmatmul.mubr.bf16.vlgmr.msra.gmra.mrb[0].mxu0 %v89_v16 }
  0x6c   :  { %715 = vmatprep.mubr.msk.bf16.mxu0 %vm885_vm0, %v884_v0  ;;  %700 = vmatpush3.bf16.msra.mxu0 %v746_v19 }
  0x6d   :  { %701 = vmatprep.subr.bf16.mxu0 %v884_v0 }
  0x70   :  { %702 = vmatpush3.bf16.msra.mxu0 %v747_v20 }
  0x71   :  { %703 = vmatprep.subr.bf16.mxu0 %v884_v0 }
  0x74   :  { %704 = vmatpush3.bf16.msra.mxu0 %v748_v21 }
  0x75   :  { %705 = vmatprep.subr.bf16.mxu0 %v884_v0 }
  0x78   :  { %706 = vmatpush3.bf16.msra.mxu0 %v749_v22 }
  0x79   :  { %707 = vmatprep.subr.bf16.mxu0 %v884_v0 }
  0x7c   :  { %708 = vmatpush3.bf16.msra.mxu0 %v750_v23 }
  0x7d   :  { %709 = vmatprep.subr.bf16.mxu0 %v884_v0 }
  0x80   :  { %710 = vmatpush3.bf16.msra.mxu0 %v751_v24 }
  0x81   :  { %711 = vmatprep.subr.bf16.mxu0 %v884_v0 }
  0x84   :  { %712 = vmatpush3.bf16.msra.mxu0 %v752_v33 }
  0x85   :  { %713 = vmatprep.subr.bf16.mxu0 %v884_v0 }
  0x88   :  { %714 = vmatpush3.bf16.msra.mxu0 %v753_v34 }
 0x13e   :  { %v195_v26 = vpop.f32.mrb[0].mxu0 }
 0x13f   :  { %v196_v27 = vadd.f32 %v589_v25, %v195_v26  ;;  %v677_v28 = vpop.f32.mrb[1].mxu0 }
 0x140   :  { %v198_v29 = vpop.f32.mrb[2].mxu0 }
 0x141   :  { %v201_v30 = vmax.f32 %v196_v27, 0.0  ;;  %v678_v31 = vpop.f32.mrb[3].mxu0 }
 0x143   :  { %v202_v32 = vpack.c.bf16 %v201_v30, %v201_v30 }
 0x145   :  { %696 = vmatmul.mubr.bf16.vlgmr.msra.gmra.mrb[0].mxu1 %v202_v32 }
 0x146   :  { %538 = vmatpush1.bf16.msra.mxu1 %v754_v35  ;;  %569 = vmatprep.mubr.bf16.mxu1 %v886_v59 }
 0x147   :  { %539 = vmatprep.subr.bf16.mxu1 %v759_v37 }
 0x14a   :  { %540 = vmatpush1.bf16.msra.mxu1 %v757_v38 }
 0x14b   :  { %541 = vmatprep.subr.bf16.mxu1 %v762_v39 }
 0x14e   :  { %542 = vmatpush1.bf16.msra.mxu1 %v760_v40 }
 0x14f   :  { %543 = vmatprep.subr.bf16.mxu1 %v765_v41 }
 0x152   :  { %544 = vmatpush1.bf16.msra.mxu1 %v763_v42 }
 0x153   :  { %545 = vmatprep.subr.bf16.mxu1 %v768_v43 }
 0x156   :  { %546 = vmatpush1.bf16.msra.mxu1 %v766_v44 }
 0x157   :  { %547 = vmatprep.subr.bf16.mxu1 %v771_v45 }
 0x15a   :  { %548 = vmatpush1.bf16.msra.mxu1 %v769_v46 }
 0x15b   :  { %549 = vmatprep.subr.bf16.mxu1 %v774_v47 }
 0x15e   :  { %550 = vmatpush1.bf16.msra.mxu1 %v772_v48 }
 0x15f   :  { %551 = vmatprep.subr.bf16.mxu1 %v777_v57 }
 0x162   :  { %552 = vmatpush1.bf16.msra.mxu1 %v775_v58 }
 0x218   :  { %v308_v50 = vpop.f32.mrb[0].mxu1 }
 0x219   :  { %v309_v51 = vadd.f32 %v598_v49, %v308_v50  ;;  %v697_v52 = vpop.f32.mrb[1].mxu1 }
 0x21a   :  { %v311_v53 = vpop.f32.mrb[2].mxu1 }
 0x21b   :  { %v314_v54 = vmax.f32 %v309_v51, 0.0  ;;  %v698_v55 = vpop.f32.mrb[3].mxu1 }
 0x21d   :  { %v315_v56 = vpack.c.bf16 %v314_v54, %v314_v54 }
 0x21f   :  { %716 = vmatmul.mubr.bf16.vlgmr.msra.gmra.mrb[4].mxu0 %v315_v56 }
 0x2f2   :  { %v421_v61 = vpop.f32.mrb[4].mxu0 }
 0x2f3   :  { %v422_v62 = vadd.f32 %v607_v60, %v421_v61  ;;  %v717_v63 = vpop.f32.mrb[5].mxu0 }
 0x2f4   :  { %v424_v0 = vpop.f32.mrb[6].mxu0 }
 0x2f5   :  { %v427_v1 = vmax.f32 %v422_v62, 0.0  ;;  %v718_v2 = vpop.f32.mrb[7].mxu0 }
 0x2f7   :  { %v428_v3 = vpack.c.bf16 %v427_v1, %v427_v1 }
 0x2f9   :  { %570 = vmatmul.mubr.bf16.vlgmr.msra.gmra.mrb[4].mxu1 %v428_v3 }
 0x3cc   :  { %v571_v11 = vpop.f32.mrb[4].mxu1 }
 0x3cd   :  { %v572_v12 = vadd.f32 %v571_v11, %v450_v9  ;;  %v573_v13 = vpop.f32.mrb[5].mxu1 }
 0x3ce   :  { %v574_v14 = vadd.f32 %v573_v13, %v454_v10  ;;  %v575_v15 = vpop.f32.mrb[6].mxu1 }
 0x3cf   :  { %778 = vtanh.f32 %v572_v12  ;;  %v576_v16 = vpop.f32.mrb[7].mxu1 }
 0x3d0   :  { %780 = vtanh.f32 %v574_v14 }
 0x3d9   :  { %v779_v17 = vpop.eup %778 }
 0x3da   :  { %v781_v18 = vpop.eup %780  ;;  %580 = vst [vmem:[%s1068_s9] sm:$0xff] %v779_v17 }
 0x3db   :  { %581 = vst [vmem:[%s1068_s9 + $0x8] sm:$0xff] %v781_v18 }
 0x3dc   :  { %586 = vsyncpa [#allocation3], 1 }
 0x3dd   :  { %587 = vsyncpa [#allocation5], 1 }
 0x3de   :  { %588 = vsyncpa [#allocation8], 1 }

</bundles_post_ra>
